<compile_context>
chip_gen: v7x
topology: tpu7x:2x2x1
jax: 0.10.0
libtpu: 0.0.40
codegen_flags: <defaults>
</compile_context>

<pallas_src>
import functools

import jax
import jax.numpy as jnp
from jax import lax
from jax.experimental import pallas as pl
from jax.experimental.pallas import tpu as pltpu


def _round_up(a, b):
    return (a + b - 1) // b * b


def _cdiv(a, b):
    return -(-a // b)


def _dsconv_kernel(x_ref, bnd_ref, wdw_ref, wpw_ref, beff_ref, o_ref, *, stride, l_out):
    """One (batch, length-tile) grid step.

    x_ref:    (1, s, C_in, T)    input columns for this tile
              stride==1 : raw x (no padding, no HBM copy)
              stride>=2 : de-interleaved padded input; phase r holds x_pad[.*s + r]
    bnd_ref:  (1, 1, s, C_in, 2) [left, right] neighbour columns of this tile
                                 (zero outside the (padded) signal)
    wdw_ref:  (C_in, 3)          depthwise weights
    wpw_ref:  (C_out, C_in)      pointwise weights
    beff_ref: (C_out, 1)         folded bias  W_pw @ b_dw + b_pw   (f32)
    o_ref:    (1, C_out, T)
    """
    s = x_ref.shape[1]
    c_in = x_ref.shape[2]
    tl = x_ref.shape[3]
    w = wdw_ref[...]
    bnd = bnd_ref[0, 0]                                  # (s, C_in, 2)

    rows = [x_ref[0, r] for r in range(s)]               # each (C_in, T)

    if stride == 1:
        # Zero the garbage lanes of a partial last tile so that the k=2 tap of
        # the final valid column picks up the right-hand zero padding (pad=1).
        rem = l_out - pl.program_id(1) * tl
        lane = lax.broadcasted_iota(jnp.int32, (c_in, tl), 1)
        rows[0] = jnp.where(lane < rem, rows[0], jnp.zeros([], rows[0].dtype))
        taps = [(-1, 0), (0, 0), (1, 0)]                  # (column offset, phase)
    else:
        # padded position l*s + k  ==  column (l + q), phase r  with  q, r = divmod(k, s)
        taps = [divmod(k, stride) for k in range(3)]      # q in {0, 1}

    acc = None
    for k, (q, r) in enumerate(taps):
        base = rows[r]
        if q == 0:
            tap = base
        elif q == 1:
            right = bnd[r, :, 1:2]                        # (C_in, 1)
            tap = jnp.concatenate([base[:, 1:], right], axis=-1)
        else:  # q == -1 (stride == 1 only)
            left = bnd[r, :, 0:1]                         # (C_in, 1)
            tap = jnp.concatenate([left, base[:, :tl - 1]], axis=-1)
        term = w[:, k:k + 1] * tap                        # per-channel VPU FMA
        acc = term if acc is None else acc + term

    # Pointwise 1x1 conv: (C_out, C_in) @ (C_in, T) on the MXU, f32 accumulate.
    # (TODO v5e: if VALU-bound, fold W_dw into W_pw and use 3 small dots instead.)
    out = jnp.dot(wpw_ref[...], acc, preferred_element_type=jnp.float32)
    o_ref[0] = (out + beff_ref[...]).astype(o_ref.dtype)


def depthwise_separable_conv_3(x, w_dw, b_dw, w_pw, b_pw, stride, *, compute_dtype=None):
    """Forward of the PyTorch module.

    x:    (N, C_in, L)
    w_dw: (C_in, 1, 3)      depthwise Conv1d weight (groups=C_in, k=3, pad=1, stride)
    b_dw: (C_in,)
    w_pw: (C_out, C_in, 1)  pointwise Conv1d weight (k=1)
    b_pw: (C_out,)
    compute_dtype: None -> f32 (reference parity); jnp.bfloat16 halves HBM bytes
                   on v6e/v7x (numerics change, keep a looser tolerance).
    returns (N, C_out, L_out)
    """
    N, C_in, L = x.shape
    C_out = w_pw.shape[0]
    s = int(stride)
    L_out = (L + 2 - 3) // s + 1
    cdt = jnp.float32 if compute_dtype is None else jnp.dtype(compute_dtype)

    # Weights; depthwise bias folded into the pointwise bias (kept in f32).
    w_dw2 = w_dw.reshape(C_in, 3)
    w_pw2 = w_pw.reshape(C_out, C_in)
    b_eff = (w_pw2.astype(jnp.float32) @ b_dw.reshape(C_in, 1).astype(jnp.float32)
             + b_pw.reshape(C_out, 1).astype(jnp.float32))

    # ---- kernel-side input layout ----
    if s == 1:
        # No pad, no copy: raw x; the reshape only adds a singleton "phase" axis.
        l_cols = L
        xcols = x.astype(cdt).reshape(N, 1, C_in, L)
    else:
        # Minimal de-interleave: 1 zero column on the left, a few on the right
        # (flat length (L_out+1)*s <= ~L + 2*s), one copy of ~input size.
        l_cols = L_out + 1
        flat = l_cols * s
        xp = jnp.pad(x.astype(cdt), ((0, 0), (0, 0), (1, flat - L - 1)))
        xcols = xp.reshape(N, C_in, l_cols, s).transpose(0, 3, 1, 2)  # (N, s, C_in, l_cols)

    # ---- length tiling: lane-dense 128-multiples, big tiles, >=4 grid steps ----
    vmem_budget = 16 * 1024 * 1024
    bytes_per_lane = 2 * (jnp.dtype(cdt).itemsize * s * C_in + 4 * C_out)  # dbl-buffered
    cap = max(128, (vmem_budget // max(bytes_per_lane, 1)) // 128 * 128)
    tile_l = min(2048, cap, _round_up(L_out, 128))
    while N * _cdiv(L_out, tile_l) < 4 and tile_l > 128:
        smaller = _round_up(max(128, tile_l // 2), 128)
        if smaller >= tile_l:
            break
        tile_l = smaller
    n_l_tiles = _cdiv(L_out, tile_l)

    # ---- tiny per-tile boundary columns (left, right), zero outside the signal ----
    j = jnp.arange(n_l_tiles)
    li = j * tile_l - 1
    ri = (j + 1) * tile_l
    lcol = jnp.take(xcols, jnp.clip(li, 0, l_cols - 1), axis=3)       # (N, s, C_in, n_tiles)
    lcol = jnp.where((li >= 0)[None, None, None, :], lcol, jnp.zeros([], cdt))
    rcol = jnp.take(xcols, jnp.clip(ri, 0, l_cols - 1), axis=3)
    rcol = jnp.where((ri < l_cols)[None, None, None, :], rcol, jnp.zeros([], cdt))
    bnd = jnp.stack([lcol, rcol], axis=-1)                            # (N, s, C_in, n_tiles, 2)
    bnd = jnp.transpose(bnd, (0, 3, 1, 2, 4))                         # (N, n_tiles, s, C_in, 2)

    kernel = functools.partial(_dsconv_kernel, stride=s, l_out=L_out)
    out = pl.pallas_call(
        kernel,
        out_shape=jax.ShapeDtypeStruct((N, C_out, L_out), x.dtype),
        grid_spec=pltpu.PrefetchScalarGridSpec(
            num_scalar_prefetch=0,
            grid=(N, n_l_tiles),
            in_specs=[
                pl.BlockSpec((1, s, C_in, tile_l), lambda n, t: (n, 0, 0, t)),
                pl.BlockSpec((1, 1, s, C_in, 2), lambda n, t: (n, t, 0, 0, 0)),
                pl.BlockSpec((C_in, 3), lambda n, t: (0, 0)),
                pl.BlockSpec((C_out, C_in), lambda n, t: (0, 0)),
                pl.BlockSpec((C_out, 1), lambda n, t: (0, 0)),
            ],
            out_specs=pl.BlockSpec((1, C_out, tile_l), lambda n, t: (n, 0, t)),
        ),
        compiler_params=pltpu.CompilerParams(
            dimension_semantics=("parallel", "parallel")),
    )(xcols, bnd, w_dw2.astype(cdt), w_pw2.astype(cdt), b_eff)
    return out


def _reference(x, w_dw, b_dw, w_pw, b_pw, stride):
    nin = x.shape[1]
    dw = lax.conv_general_dilated(
        x, w_dw, window_strides=(stride,), padding=((1, 1),),
        feature_group_count=nin, dimension_numbers=("NCH", "OIH", "NCH"),
    ) + b_dw[None, :, None]
    out = lax.conv_general_dilated(
        dw, w_pw, window_strides=(1,), padding=((0, 0),),
        dimension_numbers=("NCH", "OIH", "NCH"),
    ) + b_pw[None, :, None]
    return out


def _make_params(key, nin, nout, N, L):
    key, kx, k1, k2, k3, k4 = jax.random.split(key, 6)
    x = jax.random.normal(kx, (N, nin, L), dtype=jnp.float32)
    w_dw = jax.random.normal(k1, (nin, 1, 3), dtype=jnp.float32) * (1.0 / 3.0) ** 0.5
    b_dw = jax.random.normal(k2, (nin,), dtype=jnp.float32) * 0.1
    w_pw = jax.random.normal(k3, (nout, nin, 1), dtype=jnp.float32) * (1.0 / nin) ** 0.5
    b_pw = jax.random.normal(k4, (nout,), dtype=jnp.float32) * 0.1
    return key, x, w_dw, b_dw, w_pw, b_pw


if __name__ == "__main__":
    configs = [
        # (N, nin, nout, L, stride)
        (2, 8, 16, 128, 2),
        (2, 8, 16, 96, 1),
        (1, 16, 8, 100, 3),
        (1, 8, 16, 600, 1),   # multi-tile stride-1: boundary cols + partial last tile
        (1, 8, 8, 520, 2),    # multi-tile stride-2: right boundary on partial tile
    ]
    key = jax.random.PRNGKey(0)
    for (N, nin, nout, L, stride) in configs:
        key, x, w_dw, b_dw, w_pw, b_pw = _make_params(key, nin, nout, N, L)
        out = jax.block_until_ready(
            depthwise_separable_conv_3(x, w_dw, b_dw, w_pw, b_pw, stride))
        ref = _reference(x, w_dw, b_dw, w_pw, b_pw, stride)
        assert out.shape == ref.shape, (out.shape, ref.shape)
        err = float(jnp.max(jnp.abs(out - ref)))
        assert jnp.allclose(out, ref, rtol=1e-5, atol=1e-5), (stride, L, err)

    # Optional bf16 input path (v6e/v7x HBM saving); looser tolerance vs f32 ref.
    N, nin, nout, L, stride = 2, 16, 16, 256, 1
    key, x, w_dw, b_dw, w_pw, b_pw = _make_params(key, nin, nout, N, L)
    out = jax.block_until_ready(
        depthwise_separable_conv_3(x, w_dw, b_dw, w_pw, b_pw, stride,
                                   compute_dtype=jnp.bfloat16))
    ref = _reference(x, w_dw, b_dw, w_pw, b_pw, stride)
    assert out.shape == ref.shape, (out.shape, ref.shape)
    errb = float(jnp.max(jnp.abs(out - ref)))
    assert jnp.allclose(out, ref, rtol=1e-1, atol=1e-1), errb

    print("KERNEL_OK")
</pallas_src>

<mosaic_0001>
module attributes {stable_mosaic.version = 11 : i64} {
  func.func @_dsconv_kernel(%arg0: i32, %arg1: i32, %arg2: memref<1x2x8x128xf32, #tpu.memory_space<vmem>>, %arg3: memref<1x1x2x8x2xf32, #tpu.memory_space<vmem>>, %arg4: memref<8x3xf32, #tpu.memory_space<vmem>>, %arg5: memref<16x8xf32, #tpu.memory_space<vmem>>, %arg6: memref<16x1xf32, #tpu.memory_space<vmem>>, %arg7: memref<1x16x128xf32, #tpu.memory_space<vmem>>) attributes {dimension_semantics = [#tpu.dimension_semantics<parallel>, #tpu.dimension_semantics<parallel>], iteration_bounds = array<i64: 2, 1>, scalar_prefetch = 0 : i64, scratch_operands = 0 : i64, tpu.core_type = #tpu.core_type<tc>, window_params = [{transform_indices = @transform_0, window_bounds = array<i64: 1, 2, 8, 128>}, {transform_indices = @transform_1, window_bounds = array<i64: 1, 1, 2, 8, 2>}, {pipeline_mode = #tpu.pipeline_mode<synchronous>, transform_indices = @transform_2, window_bounds = array<i64: 8, 3>}, {pipeline_mode = #tpu.pipeline_mode<synchronous>, transform_indices = @transform_3, window_bounds = array<i64: 16, 8>}, {pipeline_mode = #tpu.pipeline_mode<synchronous>, transform_indices = @transform_4, window_bounds = array<i64: 16, 1>}, {transform_indices = @transform_5, window_bounds = array<i64: 1, 16, 128>}]} {
    %c0 = arith.constant 0 : index
    %c0_0 = arith.constant 0 : index
    %0 = vector.load %arg4[%c0, %c0_0] : memref<8x3xf32, #tpu.memory_space<vmem>>, vector<8x3xf32>
    %c0_1 = arith.constant 0 : index
    %c0_2 = arith.constant 0 : index
    %c0_3 = arith.constant 0 : index
    %c0_4 = arith.constant 0 : index
    %c0_5 = arith.constant 0 : index
    %1 = vector.load %arg3[%c0_1, %c0_2, %c0_3, %c0_4, %c0_5] : memref<1x1x2x8x2xf32, #tpu.memory_space<vmem>>, vector<1x1x2x8x2xf32>
    %2 = vector.shape_cast %1 : vector<1x1x2x8x2xf32> to vector<2x8x2xf32>
    %c0_6 = arith.constant 0 : index
    %c0_7 = arith.constant 0 : index
    %c0_8 = arith.constant 0 : index
    %c0_9 = arith.constant 0 : index
    %3 = vector.load %arg2[%c0_6, %c0_7, %c0_8, %c0_9] : memref<1x2x8x128xf32, #tpu.memory_space<vmem>>, vector<1x1x8x128xf32>
    %4 = vector.shape_cast %3 : vector<1x1x8x128xf32> to vector<8x128xf32>
    %c0_10 = arith.constant 0 : index
    %c1 = arith.constant 1 : index
    %c0_11 = arith.constant 0 : index
    %c0_12 = arith.constant 0 : index
    %5 = vector.load %arg2[%c0_10, %c1, %c0_11, %c0_12] : memref<1x2x8x128xf32, #tpu.memory_space<vmem>>, vector<1x1x8x128xf32>
    %6 = vector.shape_cast %5 : vector<1x1x8x128xf32> to vector<8x128xf32>
    %7 = vector.extract_strided_slice %0 {offsets = [0, 0], sizes = [8, 1], strides = [1, 1]} : vector<8x3xf32> to vector<8x1xf32>
    %8 = vector.broadcast %7 : vector<8x1xf32> to vector<8x128xf32>
    %9 = arith.mulf %8, %4 : vector<8x128xf32>
    %10 = vector.extract_strided_slice %0 {offsets = [0, 1], sizes = [8, 1], strides = [1, 1]} : vector<8x3xf32> to vector<8x1xf32>
    %11 = vector.broadcast %10 : vector<8x1xf32> to vector<8x128xf32>
    %12 = arith.mulf %11, %6 : vector<8x128xf32>
    %13 = arith.addf %9, %12 : vector<8x128xf32>
    %14 = vector.extract_strided_slice %2 {offsets = [0, 0, 1], sizes = [1, 8, 1], strides = [1, 1, 1]} : vector<2x8x2xf32> to vector<1x8x1xf32>
    %15 = vector.shape_cast %14 : vector<1x8x1xf32> to vector<8x1xf32>
    %16 = vector.extract_strided_slice %4 {offsets = [0, 1], sizes = [8, 127], strides = [1, 1]} : vector<8x128xf32> to vector<8x127xf32>
    %17 = tpu.concatenate %16, %15 in 1 : vector<8x127xf32>, vector<8x1xf32> -> vector<8x128xf32>
    %18 = vector.extract_strided_slice %0 {offsets = [0, 2], sizes = [8, 1], strides = [1, 1]} : vector<8x3xf32> to vector<8x1xf32>
    %19 = vector.broadcast %18 : vector<8x1xf32> to vector<8x128xf32>
    %20 = arith.mulf %19, %17 : vector<8x128xf32>
    %21 = arith.addf %13, %20 : vector<8x128xf32>
    %c0_13 = arith.constant 0 : index
    %c0_14 = arith.constant 0 : index
    %22 = vector.load %arg5[%c0_13, %c0_14] : memref<16x8xf32, #tpu.memory_space<vmem>>, vector<16x8xf32>
    %cst = arith.constant dense<0.000000e+00> : vector<16x128xf32>
    %23 = tpu.matmul %22, %21, %cst {dimension_numbers = #tpu.dot_dimension_numbers<[1], [0], [0], [1], [0, 0, 1, 1], [], []>} : vector<16x8xf32>, vector<8x128xf32>, vector<16x128xf32> -> vector<16x128xf32>
    %c0_15 = arith.constant 0 : index
    %c0_16 = arith.constant 0 : index
    %24 = vector.load %arg6[%c0_15, %c0_16] : memref<16x1xf32, #tpu.memory_space<vmem>>, vector<16x1xf32>
    %25 = vector.broadcast %24 : vector<16x1xf32> to vector<16x128xf32>
    %26 = arith.addf %23, %25 : vector<16x128xf32>
    %c0_17 = arith.constant 0 : index
    %c0_18 = arith.constant 0 : index
    %c0_19 = arith.constant 0 : index
    %27 = vector.load %arg7[%c0_17, %c0_18, %c0_19] : memref<1x16x128xf32, #tpu.memory_space<vmem>>, vector<1x16x128xf32>
    %28 = vector.shape_cast %27 : vector<1x16x128xf32> to vector<16x128xf32>
    %29 = vector.shape_cast %26 : vector<16x128xf32> to vector<1x16x128xf32>
    tpu.vector_store %arg7[%c0_17, %c0_18, %c0_19], %29 {strides = array<i32>} : memref<1x16x128xf32, #tpu.memory_space<vmem>>, vector<1x16x128xf32>,
    return
  }
  func.func @transform_0(%arg0: i32, %arg1: i32) -> (i32, i32, i32, i32) {
    %c0_i32 = arith.constant 0 : i32
    %c0_i32_0 = arith.constant 0 : i32
    %c0_i32_1 = arith.constant 0 : i32
    return %arg0, %c0_i32, %c0_i32_0, %arg1 : i32, i32, i32, i32
  }
  func.func @transform_1(%arg0: i32, %arg1: i32) -> (i32, i32, i32, i32, i32) {
    %c0_i32 = arith.constant 0 : i32
    %c0_i32_0 = arith.constant 0 : i32
    %c0_i32_1 = arith.constant 0 : i32
    %c0_i32_2 = arith.constant 0 : i32
    return %arg0, %arg1, %c0_i32, %c0_i32_0, %c0_i32_1 : i32, i32, i32, i32, i32
  }
  func.func @transform_2(%arg0: i32, %arg1: i32) -> (i32, i32) {
    %c0_i32 = arith.constant 0 : i32
    %c0_i32_0 = arith.constant 0 : i32
    %c0_i32_1 = arith.constant 0 : i32
    return %c0_i32, %c0_i32_0 : i32, i32
  }
  func.func @transform_3(%arg0: i32, %arg1: i32) -> (i32, i32) {
    %c0_i32 = arith.constant 0 : i32
    %c0_i32_0 = arith.constant 0 : i32
    %c0_i32_1 = arith.constant 0 : i32
    return %c0_i32, %c0_i32_0 : i32, i32
  }
  func.func @transform_4(%arg0: i32, %arg1: i32) -> (i32, i32) {
    %c0_i32 = arith.constant 0 : i32
    %c0_i32_0 = arith.constant 0 : i32
    %c0_i32_1 = arith.constant 0 : i32
    return %c0_i32, %c0_i32_0 : i32, i32
  }
  func.func @transform_5(%arg0: i32, %arg1: i32) -> (i32, i32, i32) {
    %c0_i32 = arith.constant 0 : i32
    %c0_i32_0 = arith.constant 0 : i32
    return %arg0, %c0_i32, %arg1 : i32, i32, i32
  }
}

</mosaic_0001>

<bundles_post_ra>
// kernel: tpu_custom_call.1
= control target key start
LH: loop header
LB: loop body
LE: loop exit
PB: predicated region body
PF: predicated region fallthrough
CT: control target
= control target key end

     0   :  { %10 = vsyncpa [#allocation3], 0  ;;  %s876_s0 = inlined_call_operand.vmem [shape: f32[2,2,8,65], index: 0, kind: input, shape index: {}]   ;;  %s877_s1 = inlined_call_operand.vmem [shape: f32[2,1,2,8,2], index: 1, kind: input, shape index: {}]   ;;  %s878_s2 = inlined_call_operand.vmem [shape: f32[8,3], index: 2, kind: input, shape index: {}]   ;;  %s879_s3 = inlined_call_operand.vmem [shape: f32[16,8], index: 3, kind: input, shape index: {}]   ;;  %s880_s4 = inlined_call_operand.vmem [shape: f32[16,1], index: 4, kind: input, shape index: {}]   ;;  %s881_s5 = inlined_call_operand.hbm [shape: f32[2,16,64], index: 5, kind: output, shape index: {}]  }
   0x1   :  { %12 = vsyncpa [#allocation3 + $0x1], 0  ;;  %s741_s18 = smov 0   ;;  %s743_s19 = smov 0  }
   0x2   :  { %s745_s20 = smov 0   ;;  %s747_s21 = smov 0  }
   0x3   :  { %s749_s22 = smov 0   ;;  %s751_s23 = smov 0  }
   0x4 LB: > { %s527_s24 = sadd.s32 4294967295, %s701_s23   ;;  %s528_s25 = sadd.s32 4294967294, %s701_s23   ;;  %s701_s23 = sphi %s751_s23, %s18_s23   ;;  %s697_s22 = sphi %s749_s22, %s888_s22   ;;  %s693_s21 = sphi %s747_s21, %s887_s21   ;;  %s689_s20 = sphi %s745_s20, %s886_s20   ;;  %s685_s19 = sphi %s743_s19, %s885_s19   ;;  %s681_s18 = sphi %s741_s18, %s884_s18  }
   0x5   : > { %s30_s26 = sadd.s32 1, %s697_s22  ;;  %s158_s27 = sadd.s32 1, %s689_s20 }
   0x6   : > { %p32_p0 = scmp.ge.s32.totalorder %s30_s26, 2  ;;  %p168_p1 = scmp.ne.s32.totalorder %s689_s20, %s685_s19 }
   0x7   : > { %p169_p2 = scmp.eq.s32.totalorder %s527_s24, 1  ;;  %p174_p3 = scmp.ne.s32.totalorder %s685_s19, %s681_s18 }
   0x8   : > { %s890_s26 = smov (%p32_p0, %s30_s26), 0  ;;  %p175_p5 = scmp.eq.s32.totalorder %s528_s25, 1 }
   0x9   : > { %p781_p4 = por %p169_p2, %p168_p1  ;;  %s153_s29 = ssub.s32 %s697_s22, %s890_s26 }
   0xa   : > { %p531_p6 = scmp.ge.s32.totalorder %s701_s23, 1  ;;  %p156_p7 = scmp.eq.s32.totalorder %s153_s29, 0 }
   0xb   : > { %p788_p8 = por %p175_p5, %p174_p3  ;;  %p225_p9 = scmp.lt.s32.totalorder %s701_s23, 3 }
   0xc   : > { %s794_s6 = scalar_select %p156_p7, %s689_s20, %s158_s27  }
   0xd   : > { %p226_p10 = pnand %p531_p6, %p225_p9 }
   0xe   : > { %v282_v0 = vld [vmem:[%s878_s2] sm:$0xff] (!%p226_p10)  ;;  %p265_p11 = scmp.lt.s32.totalorder (!%p226_p10), %s693_s21, 1  ;;  %v703_v1 = vmov (!%p226_p10), 2   ;;  %v704_v2 = vmov (!%p226_p10), 0   ;;  %v705_v3 = vmov (!%p226_p10), 1   ;;  %s706_s17 = smov (!%p226_p10), 127  }
   0xf   : > { %229 = sbr.rel (%p226_p10) target bundleno = 389 (0x185), region = 40  ;;  %620 = vset.pattern.permute.xlu1 (!%p226_p10), %v703_v1  ;;  %618 = vset.pattern.permute.xlu0 (!%p226_p10), %v704_v2  ;;  %s707_s24 = smov (!%p226_p10), 126   ;;  %v315_v6 = vld [vmem:[%s879_s3] sm:$0xff] (!%p226_p10)  ;;  %vm329_vm0 = vcmask (!%p226_p10), 64512   ;;  %v318_v7 = vld [vmem:[%s880_s4 + $0x8] sm:$0xff] (!%p226_p10)  ;;  %vm307_vm1 = vcmask (!%p226_p10), 1039360  }
  0x10   : > { %310 = vperm.xlu1 (!%p226_p10), %620, %v282_v0   ;;  %289 = vperm.xlu0 (!%p226_p10), %618, %v282_v0   ;;  %v317_v8 = vld [vmem:[%s880_s4] sm:$0xff] (!%p226_p10)  ;;  %v316_v21 = vld [vmem:[%s879_s3 + $0x8] sm:$0xff] (!%p226_p10)  ;;  %s262_s12 = sand.u32 (!%p226_p10), 1, %s685_s19   ;;  %s708_s29 = smov (!%p226_p10), [#allocation2]  }
  0x11   : > { %553 = vmatprep.mubr.msk.f32.mxu0 (!%p226_p10), %vm329_vm0, %v315_v6  ;;  %s830_s27 = scalar_lea.sflag (!%p226_p10), [#allocation3], %s262_s12  ;;  %s627_s7 = sshll.u32 (!%p226_p10), %s708_s29, 4  ;;  %s628_s7 = int_to_ptr.vmem [resolvable:$false] %s627_s7 }
  0x12   : > { %s629_s8 = scalar_lea.vmem (!%p226_p10), %s628_s7, 512 }
  0x14   : > { %619 = vset.pattern.permute.xlu0 (!%p226_p10), %v705_v3  ;;  %622 = vset.pattern.permute.xlu1 (!%p226_p10), %v704_v2 }
  0x15   : > { %294 = vperm.xlu0 (!%p226_p10), %619, %v282_v0  }
  0x16   : > { %s266_s9 = scalar_select %p265_p11, %s693_s21, 1 }
  0x18   : > { %s545_s10 = sshll.u32 %s266_s9, 4 }
  0x19   : > { %s272_s13 = scalar_lea.vmem %s876_s0, %s545_s10  ;;  %s281_s16 = scalar_lea.vmem %s877_s1, %s545_s10  ;;  %621 = vset.pattern.permute.xlu0 %v704_v2 }
  0x1a   : > { %v284_v4 = vld [vmem:[%s272_s13] sm:$0xff]  ;;  %321 = vperm.xlu0 %621, %v317_v8   ;;  %v537_v11 = vld [vmem:[%s272_s13 + $0x8] sm:$0xff]  ;;  %s532_s13 = sshll.u32 %s262_s12, 4 }
  0x1b   : > { %300 = vrot.lane.b32.xlu1 %v284_v4, %s706_s17  ;;  %v283_v5 = vld [vmem:[%s281_s16] sm:$0xff]  ;;  %s264_s14 = scalar_lea.vmem [#allocation2], %s532_s13  ;;  %s547_s16 = sshll.u32 %s693_s21, 8 }
  0x1c   : > { %s428_s15 = sshll.u32 %s264_s14, 4  ;;  %s828_s25 = scalar_lea.hbm %s881_s5, %s547_s16  ;;  %s823_s15 = int_to_ptr.vmem [resolvable:$true] %s428_s15 }
  0x1d   : > { %s623_s21 = scalar_lea.vmem %s823_s15, 256  ;;  %p630_p1 = scmp.lt.s32.totalorder %s823_s15, %s628_s7 }
  0x1e   : > { %p624_p12 = scmp.ne.s32.totalorder %s823_s15, %s623_s21  ;;  %p631_p2 = scmp.lt.s32.totalorder %s629_s8, %s623_s21 }
  0x1f   : > { %304 = vrot.lane.b32.xlu1 %v283_v5, %s707_s24 }
  0x20   : > { %p625_p13 = pnand %p624_p12, %p781_p4  ;;  %p632_p3 = por %p631_p2, %p630_p1 }
  0x22   : > { %p626_p0 = pneg %p625_p13 }
  0x23   : > { %326 = vperm.xlu1 %622, %v318_v7  }
  0x24   : > { %p633_p5 = pnand %p632_p3, %p626_p0 }
  0x8f   : > { %v311_v9 = vpop.permute.xlu1 %310  ;;  %v290_v10 = vpop.permute.xlu0 %289 }
  0x90   : > { %v292_v15 = vmul.f32 %v290_v10, %v284_v4 }
  0x93   : > { %v301_v12 = vpop.permute.xlu1 %300 }
  0x94   : > { %v295_v13 = vpop.permute.xlu0 %294 }
  0x95   : > { %v297_v14 = vmul.f32 %v537_v11, %v295_v13 }
  0x97   : > { %v305_v16 = vpop.permute.xlu1 %304  ;;  %v298_v18 = vadd.f32 %v297_v14, %v292_v15 }
  0x98   : > { %v308_v17 = vsel %vm307_vm1, %v301_v12, %v305_v16 }
  0x99   : > { %v313_v19 = vmul.f32 %v311_v9, %v308_v17  ;;  %v322_v23 = vpop.permute.xlu0 %321 }
  0x9b   : > { %v314_v20 = vadd.f32 %v313_v19, %v298_v18 }
  0x9d   : > { %551 = vmatprep.subr.mxu0 %v314_v20 }
  0x9e   : > { %552 = vmatpush3.msra.mxu0 %v314_v20 }
  0x9f   : > { %554 = vmatmul.mubr.msk.f32.vlgmr.msra.gmra.mrb[0].mxu0 %vm329_vm0, %v316_v21 }
  0xa2   : > { %v327_v22 = vpop.permute.xlu1 %326 }
 0x172   : > { %v555_v24 = vpop.f32.mrb[0].mxu0 }
 0x173   : > { %v408_v25 = vadd.f32 %v555_v24, %v327_v22  ;;  %v402_v26 = vpop.f32.mrb[1].mxu0 }
 0x174   : > { %v403_v27 = vadd.f32 %v402_v26, %v322_v23 }
 0x175   : > { %412 = vst [vmem:[%s264_s14 + $0x8] sm:$0xff] %v408_v25 }
 0x176   : > { %411 = vst [vmem:[%s264_s14] sm:$0xff] %v403_v27 }
 0x177   : > { %636 = shalt.err (!%p633_p5)
}
 0x178   : > { %s637_s9 = scalar_lea.hbm %s828_s25, 256  ;;  %s641_s12 = scalar_lea.hbm %s881_s5, 512 }
 0x179   : > { %p638_p6 = scmp.ne.s32.totalorder %s828_s25, %s637_s9  ;;  %p642_p10 = scmp.lt.u32.totalorder %s828_s25, %s881_s5 }
 0x17a   : > { %p643_p11 = scmp.lt.u32.totalorder %s641_s12, %s637_s9  ;;  %p645_p13 = scmp.lt.u32.totalorder %s637_s9, %s828_s25 }
 0x17b   : > { %p639_p7 = pnand %p638_p6, %p781_p4 }
 0x17c   : > { %p644_p12 = por %p643_p11, %p642_p10 }
 0x17d   : > { %p640_p9 = pneg %p639_p7 }
 0x17e   : > { %p646_p0 = por %p645_p13, %p644_p12 }
 0x180   : > { %p647_p1 = pnand %p646_p0, %p640_p9 }
 0x182   : > { %650 = shalt.err (!%p647_p1)
}
 0x183   : > { %s709_s16 = smov 128   ;;  %s710_s17 = smov 8  }
 0x184   : > { %556 = dma.vmem_to_hbm [thread:$0]  (%p781_p4), %s823_s15, 256, %s828_s25, %s830_s27, %s709_s16, %s709_s16, %s710_s17  }
 0x185 PF: > { %p562_p2 = scmp.ge.s32.totalorder %s701_s23, 2  ;;  %s443_s24 = sand.u32 1, %s681_s18  }
 0x186   : > { %s444_s21 = scalar_lea.sflag [#allocation3], %s443_s24 }
 0x187   : > { %p559_p3 = pnand %p562_p2, %p788_p8 }
 0x189   : > { %676 = dma.done.wait (!%p559_p3), %s444_s21, 256  }
 0x18a   : > { %678 = vsyncadd (!%p559_p3), %s444_s21, 4294967040  ;;  %s18_s23 = sadd.s32 1, %s701_s23   ;;  %s884_s18 = smov %s685_s19 }
 0x18b   : > { %p15_p5 = scmp.ge.s32.totalorder %s18_s23, 4   ;;  %s885_s19 = smov %s689_s20 }
 0x18c   : > { %s886_s20 = smov %s794_s6  ;;  %s887_s21 = smov %s697_s22 }
 0x18d   : > { %s888_s22 = smov %s890_s26  ;;  %17 = sbr.rel (!%p15_p5) target bundleno = 4 (0x4), region = 79 }
 0x194   :  { %449 = vsyncpa [#allocation3], 1 }
 0x195   :  { %451 = vsyncpa [#allocation3 + $0x1], 1 }

</bundles_post_ra>
